<compile_context>
chip_gen: v7x
topology: tpu7x:2x2x1
jax: 0.10.0
libtpu: 0.0.40
codegen_flags: <defaults>
</compile_context>

<pallas_src>
import jax
import jax.numpy as jnp
from jax.experimental import pallas as pl
from jax.experimental.pallas import tpu as pltpu


def _round_up(x, m):
    return (x + m - 1) // m * m


def _vmem_budget():
    """Per-generation VMEM budget (bytes) with ~20% headroom."""
    try:
        info = pltpu.get_tpu_info()
        cap = getattr(info, "vmem_capacity_bytes", None)
        if cap:
            return int(cap) * 4 // 5          # ~102 MiB on v5e/v6e, ~51 MiB on v7x
    except Exception:
        pass
    return 48 * 1024 * 1024                   # safe everywhere (v7x has 64 MiB/TC)


def _divisor_tiles(n, cap):
    """Multiples of 8 that divide n (n is a multiple of 8), descending, <= cap."""
    cap = max(8, min(cap, n))
    return [c for c in range(cap - cap % 8, 7, -8) if n % c == 0]


def _joint_vmem_need(tT, tU, tV, F_pad, out_bytes):
    need = 2 * tT * F_pad * 2                 # fused tile (bf16, double-buffered)
    need += 2 * tU * F_pad * 2                # pdec tile
    need += 2 * F_pad * tV * 2                # w_out tile (bf16)
    need += 2 * 8 * tV * 4                    # b_out tile (f32, sublane-padded)
    need += 2 * tT * tU * tV * out_bytes      # output tile
    need += tT * tU * F_pad * 2               # tanh(joint) scratch (single buffer)
    need += tT * tU * F_pad * 2               # broadcast-add temporary
    need += tT * tU * tV * 4                  # f32 logits temporary
    return need


# ---------------------------------------------------------------------------
# Kernels
# ---------------------------------------------------------------------------

def _fused_proj_kernel(enc_ref, ot_ref, w_enc_ref, b_enc_ref,
                       w_ot_ref, b_ot_ref, out_ref):
    acc = jnp.dot(enc_ref[...], w_enc_ref[...],
                  preferred_element_type=jnp.float32)
    acc = acc + jnp.dot(ot_ref[...], w_ot_ref[...],
                        preferred_element_type=jnp.float32)
    acc = acc + b_enc_ref[...] + b_ot_ref[...]
    out_ref[...] = acc.astype(out_ref.dtype)          # bf16 store


def _dec_proj_kernel(dec_ref, w_dec_ref, b_dec_ref, out_ref):
    acc = (jnp.dot(dec_ref[...], w_dec_ref[...],
                   preferred_element_type=jnp.float32)
           + b_dec_ref[...])
    out_ref[...] = acc.astype(out_ref.dtype)          # bf16 store


def _joint_out_kernel(fused_ref, pdec_ref, w_out_ref, b_out_ref, out_ref,
                      joint_ref):
    tT, tU, F = joint_ref.shape

    # tanh(joint) tile is computed once per (t,u)-tile and reused for all
    # vocab tiles (vocab axis is the innermost, sequential grid axis).
    @pl.when(pl.program_id(2) == 0)
    def _():
        fused = fused_ref[...]                        # [tT, F] bf16
        pdec = pdec_ref[...]                          # [tU, F] bf16
        joint_ref[...] = jnp.tanh(fused[:, None, :] + pdec[None, :, :])

    acts = joint_ref[...].reshape(tT * tU, F)         # bf16 LHS for the MXU
    logits = (jnp.dot(acts, w_out_ref[...],
                      preferred_element_type=jnp.float32)
              + b_out_ref[...])                       # [tT*tU, tV] f32
    out_ref[...] = logits.reshape(tT, tU, -1).astype(out_ref.dtype)


# ---------------------------------------------------------------------------
# Wrapper
# ---------------------------------------------------------------------------

def ot_guided_joint_network(encoder_out, decoder_out, ot_decoder_feature,
                            params, *, max_tile_t=128, max_tile_u=128,
                            max_tile_v=2048, logits_dtype=jnp.float32):
    """encoder_out [B,T,d_enc], decoder_out [B,U,d_dec],
    ot_decoder_feature [B,T,d_dec] -> logits [B,T,U,vocab]."""
    f32, bf16 = jnp.float32, jnp.bfloat16
    B, T, d_enc = encoder_out.shape
    _, U, d_dec = decoder_out.shape
    d_fusion = params["w_enc"].shape[1]
    vocab = params["w_out"].shape[1]

    F_pad = _round_up(d_fusion, 128)
    V_pad = _round_up(vocab, 128)
    T8 = _round_up(T, 8)
    U8 = _round_up(U, 8)

    out_bytes = jnp.dtype(logits_dtype).itemsize
    budget = _vmem_budget()

    # ---- vocab tile: bound the resident (double-buffered) output weight ----
    if 2 * F_pad * V_pad * 2 <= budget // 3:
        tV = V_pad                                    # whole weight, fetched once
    else:
        cap = (budget // 3) // (2 * F_pad * 2)
        cap = max(128, min(max_tile_v, cap // 128 * 128))
        tV = 128
        for c in range(cap, 127, -128):
            if V_pad % c == 0:
                tV = c
                break
    nV = V_pad // tV

    # ---- (T, U) tiles: budget-driven, dividing the padded extents ----------
    t_cands = _divisor_tiles(T8, max_tile_t)
    u_cands = _divisor_tiles(U8, max_tile_u)
    best = None
    for a in t_cands:
        for b in u_cands:
            if (_joint_vmem_need(a, b, tV, F_pad, out_bytes) <= budget
                    and (best is None or a * b > best[0] * best[1])):
                best = (a, b)
    if best is None:
        raise ValueError(
            f"OT joint tile plan does not fit VMEM budget ({budget} B): "
            f"F_pad={F_pad}, V_pad={V_pad}, tV={tV}")
    tT, tU = best
    nT, nU = T8 // tT, U8 // tU
    need = _joint_vmem_need(tT, tU, tV, F_pad, out_bytes)
    vmem_limit = int(min(budget, max(2 * need, 32 * 1024 * 1024)))

    # ---- pad + flatten inputs / parameters ---------------------------------
    def pad_to(x, shape):
        pads = [(0, s - d) for s, d in zip(shape, x.shape)]
        return jnp.pad(x, pads) if any(p[1] for p in pads) else x

    enc2d = pad_to(encoder_out.astype(f32), (B, T8, d_enc)).reshape(B * T8, d_enc)
    ot2d = pad_to(ot_decoder_feature.astype(f32), (B, T8, d_dec)).reshape(B * T8, d_dec)
    dec2d = pad_to(decoder_out.astype(f32), (B, U8, d_dec)).reshape(B * U8, d_dec)

    w_enc = pad_to(params["w_enc"].astype(f32), (d_enc, F_pad))
    b_enc = pad_to(params["b_enc"].astype(f32), (1, F_pad))
    w_ot = pad_to(params["w_ot"].astype(f32), (d_dec, F_pad))
    b_ot = pad_to(params["b_ot"].astype(f32), (1, F_pad))
    w_dec = pad_to(params["w_dec"].astype(f32), (d_dec, F_pad))
    b_dec = pad_to(params["b_dec"].astype(f32), (1, F_pad))
    w_out = pad_to(params["w_out"].astype(f32), (F_pad, V_pad)).astype(bf16)
    b_out = pad_to(params["b_out"].astype(f32), (1, V_pad))

    # ---- 1) fused = enc @ W_enc + ot @ W_ot + biases  -> bf16 [B*T8, F_pad] --
    rows_t = B * T8
    tRt = _divisor_tiles(rows_t, 256)[0]
    fused2d = pl.pallas_call(
        _fused_proj_kernel,
        out_shape=jax.ShapeDtypeStruct((rows_t, F_pad), bf16),
        grid_spec=pltpu.PrefetchScalarGridSpec(
            num_scalar_prefetch=0,
            grid=(rows_t // tRt,),
            in_specs=[
                pl.BlockSpec((tRt, d_enc), lambda i: (i, 0)),
                pl.BlockSpec((tRt, d_dec), lambda i: (i, 0)),
                pl.BlockSpec((d_enc, F_pad), lambda i: (0, 0)),
                pl.BlockSpec((1, F_pad), lambda i: (0, 0)),
                pl.BlockSpec((d_dec, F_pad), lambda i: (0, 0)),
                pl.BlockSpec((1, F_pad), lambda i: (0, 0)),
            ],
            out_specs=pl.BlockSpec((tRt, F_pad), lambda i: (i, 0)),
        ),
        compiler_params=pltpu.CompilerParams(
            dimension_semantics=("parallel",)),
    )(enc2d, ot2d, w_enc, b_enc, w_ot, b_ot)

    # ---- 2) pdec = dec @ W_dec + b_dec  -> bf16 [B*U8, F_pad] ---------------
    rows_u = B * U8
    tRu = _divisor_tiles(rows_u, 256)[0]
    pdec2d = pl.pallas_call(
        _dec_proj_kernel,
        out_shape=jax.ShapeDtypeStruct((rows_u, F_pad), bf16),
        grid_spec=pltpu.PrefetchScalarGridSpec(
            num_scalar_prefetch=0,
            grid=(rows_u // tRu,),
            in_specs=[
                pl.BlockSpec((tRu, d_dec), lambda i: (i, 0)),
                pl.BlockSpec((d_dec, F_pad), lambda i: (0, 0)),
                pl.BlockSpec((1, F_pad), lambda i: (0, 0)),
            ],
            out_specs=pl.BlockSpec((tRu, F_pad), lambda i: (i, 0)),
        ),
        compiler_params=pltpu.CompilerParams(
            dimension_semantics=("parallel",)),
    )(dec2d, w_dec, b_dec)

    # ---- 3) logits = tanh(fused + pdec) @ W_out + b_out ---------------------
    weight_reads = 1 if nV == 1 else (B * nT * nU)
    cost = pl.CostEstimate(
        flops=2 * B * T8 * U8 * F_pad * V_pad,
        transcendentals=B * T8 * U8 * F_pad,
        bytes_accessed=(rows_t * F_pad * 2
                        + B * nT * U8 * F_pad * 2
                        + weight_reads * F_pad * V_pad * 2
                        + B * T8 * U8 * V_pad * out_bytes),
    )

    logits3d = pl.pallas_call(
        _joint_out_kernel,
        out_shape=jax.ShapeDtypeStruct((rows_t, U8, V_pad), logits_dtype),
        grid_spec=pltpu.PrefetchScalarGridSpec(
            num_scalar_prefetch=0,
            grid=(B * nT, nU, nV),                    # flat B*T-tiles lead (megacore)
            in_specs=[
                pl.BlockSpec((tT, F_pad), lambda bi, j, v: (bi, 0)),
                pl.BlockSpec((tU, F_pad),
                             lambda bi, j, v: ((bi // nT) * nU + j, 0)),
                pl.BlockSpec((F_pad, tV), lambda bi, j, v: (0, v)),
                pl.BlockSpec((1, tV), lambda bi, j, v: (0, v)),
            ],
            out_specs=pl.BlockSpec((tT, tU, tV), lambda bi, j, v: (bi, j, v)),
            scratch_shapes=[pltpu.VMEM((tT, tU, F_pad), bf16)],
        ),
        compiler_params=pltpu.CompilerParams(
            dimension_semantics=("parallel", "parallel", "arbitrary"),
            vmem_limit_bytes=vmem_limit),
        cost_estimate=cost,
    )(fused2d, pdec2d, w_out, b_out)

    logits = logits3d.reshape(B, T8, U8, V_pad)
    if (T8, U8, V_pad) != (T, U, vocab):              # no-op when already aligned
        logits = logits[:, :T, :U, :vocab]
    return logits


# ---------------------------------------------------------------------------
# Parameter init (nn.Linear-style, stored as [in, out]) and pure-JAX reference.
# ---------------------------------------------------------------------------

def init_params(key, d_enc, d_dec, d_fusion, vocab_size):
    ks = jax.random.split(key, 8)

    def linear(kw, kb, fan_in, fan_out):
        bound = 1.0 / jnp.sqrt(fan_in)
        w = jax.random.uniform(kw, (fan_in, fan_out), jnp.float32, -bound, bound)
        b = jax.random.uniform(kb, (1, fan_out), jnp.float32, -bound, bound)
        return w, b

    w_enc, b_enc = linear(ks[0], ks[1], d_enc, d_fusion)
    w_ot, b_ot = linear(ks[2], ks[3], d_dec, d_fusion)
    w_dec, b_dec = linear(ks[4], ks[5], d_dec, d_fusion)
    w_out, b_out = linear(ks[6], ks[7], d_fusion, vocab_size)
    return dict(w_enc=w_enc, b_enc=b_enc, w_ot=w_ot, b_ot=b_ot,
                w_dec=w_dec, b_dec=b_dec, w_out=w_out, b_out=b_out)


def reference_forward(encoder_out, decoder_out, ot_decoder_feature, p):
    fused = (encoder_out @ p["w_enc"] + p["b_enc"]
             + ot_decoder_feature @ p["w_ot"] + p["b_ot"])
    pdec = decoder_out @ p["w_dec"] + p["b_dec"]
    joint = jnp.tanh(fused[:, :, None, :] + pdec[:, None, :, :])
    return joint @ p["w_out"] + p["b_out"]


if __name__ == "__main__":
    # Small shapes that exercise the padding paths (T not a multiple of 8,
    # d_fusion/vocab not multiples of 128).
    B, T, U = 2, 12, 8
    d_enc, d_dec, d_fusion, vocab = 16, 24, 40, 72

    key = jax.random.PRNGKey(0)
    k_enc, k_dec, k_ot, k_param = jax.random.split(key, 4)

    encoder_out = jax.random.normal(k_enc, (B, T, d_enc), jnp.float32)
    decoder_out = jax.random.normal(k_dec, (B, U, d_dec), jnp.float32)
    ot_decoder_feature = jax.random.normal(k_ot, (B, T, d_dec), jnp.float32)
    params = init_params(k_param, d_enc, d_dec, d_fusion, vocab)

    logits = ot_guided_joint_network(encoder_out, decoder_out,
                                     ot_decoder_feature, params)
    logits = jax.block_until_ready(logits)

    ref = reference_forward(encoder_out, decoder_out, ot_decoder_feature, params)
    assert logits.shape == (B, T, U, vocab)
    # bf16 intermediates / bf16 MXU operands with f32 accumulation.
    assert jnp.allclose(logits, ref, atol=1e-1, rtol=1e-1), (
        float(jnp.max(jnp.abs(logits - ref))))
    print("KERNEL_OK")
</pallas_src>

<mosaic_0001>
module attributes {stable_mosaic.version = 11 : i64} {
  func.func @_fused_proj_kernel(%arg0: i32, %arg1: memref<32x16xf32, #tpu.memory_space<vmem>>, %arg2: memref<32x24xf32, #tpu.memory_space<vmem>>, %arg3: memref<16x128xf32, #tpu.memory_space<vmem>>, %arg4: memref<1x128xf32, #tpu.memory_space<vmem>>, %arg5: memref<24x128xf32, #tpu.memory_space<vmem>>, %arg6: memref<1x128xf32, #tpu.memory_space<vmem>>, %arg7: memref<32x128xbf16, #tpu.memory_space<vmem>>) attributes {dimension_semantics = [#tpu.dimension_semantics<parallel>], iteration_bounds = array<i64: 1>, scalar_prefetch = 0 : i64, scratch_operands = 0 : i64, tpu.core_type = #tpu.core_type<tc>, window_params = [{transform_indices = @transform_0, window_bounds = array<i64: 32, 16>}, {transform_indices = @transform_1, window_bounds = array<i64: 32, 24>}, {pipeline_mode = #tpu.pipeline_mode<synchronous>, transform_indices = @transform_2, window_bounds = array<i64: 16, 128>}, {pipeline_mode = #tpu.pipeline_mode<synchronous>, transform_indices = @transform_3, window_bounds = array<i64: 1, 128>}, {pipeline_mode = #tpu.pipeline_mode<synchronous>, transform_indices = @transform_4, window_bounds = array<i64: 24, 128>}, {pipeline_mode = #tpu.pipeline_mode<synchronous>, transform_indices = @transform_5, window_bounds = array<i64: 1, 128>}, {transform_indices = @transform_6, window_bounds = array<i64: 32, 128>}]} {
    %c0 = arith.constant 0 : index
    %c0_0 = arith.constant 0 : index
    %0 = vector.load %arg1[%c0, %c0_0] : memref<32x16xf32, #tpu.memory_space<vmem>>, vector<32x16xf32>
    %c0_1 = arith.constant 0 : index
    %c0_2 = arith.constant 0 : index
    %1 = vector.load %arg3[%c0_1, %c0_2] : memref<16x128xf32, #tpu.memory_space<vmem>>, vector<16x128xf32>
    %cst = arith.constant dense<0.000000e+00> : vector<32x128xf32>
    %2 = tpu.matmul %0, %1, %cst {dimension_numbers = #tpu.dot_dimension_numbers<[1], [0], [0], [1], [0, 0, 1, 1], [], []>} : vector<32x16xf32>, vector<16x128xf32>, vector<32x128xf32> -> vector<32x128xf32>
    %c0_3 = arith.constant 0 : index
    %c0_4 = arith.constant 0 : index
    %3 = vector.load %arg2[%c0_3, %c0_4] : memref<32x24xf32, #tpu.memory_space<vmem>>, vector<32x24xf32>
    %c0_5 = arith.constant 0 : index
    %c0_6 = arith.constant 0 : index
    %4 = vector.load %arg5[%c0_5, %c0_6] : memref<24x128xf32, #tpu.memory_space<vmem>>, vector<24x128xf32>
    %cst_7 = arith.constant dense<0.000000e+00> : vector<32x128xf32>
    %5 = tpu.matmul %3, %4, %cst_7 {dimension_numbers = #tpu.dot_dimension_numbers<[1], [0], [0], [1], [0, 0, 1, 1], [], []>} : vector<32x24xf32>, vector<24x128xf32>, vector<32x128xf32> -> vector<32x128xf32>
    %6 = arith.addf %2, %5 : vector<32x128xf32>
    %c0_8 = arith.constant 0 : index
    %c0_9 = arith.constant 0 : index
    %7 = vector.load %arg4[%c0_8, %c0_9] : memref<1x128xf32, #tpu.memory_space<vmem>>, vector<1x128xf32>
    %8 = vector.broadcast %7 : vector<1x128xf32> to vector<32x128xf32>
    %9 = arith.addf %6, %8 : vector<32x128xf32>
    %c0_10 = arith.constant 0 : index
    %c0_11 = arith.constant 0 : index
    %10 = vector.load %arg6[%c0_10, %c0_11] : memref<1x128xf32, #tpu.memory_space<vmem>>, vector<1x128xf32>
    %11 = vector.broadcast %10 : vector<1x128xf32> to vector<32x128xf32>
    %12 = arith.addf %9, %11 : vector<32x128xf32>
    %13 = arith.truncf %12 : vector<32x128xf32> to vector<32x128xbf16>
    %c0_12 = arith.constant 0 : index
    %c0_13 = arith.constant 0 : index
    %14 = vector.load %arg7[%c0_12, %c0_13] : memref<32x128xbf16, #tpu.memory_space<vmem>>, vector<32x128xbf16>
    tpu.vector_store %arg7[%c0_12, %c0_13], %13 {strides = array<i32>} : memref<32x128xbf16, #tpu.memory_space<vmem>>, vector<32x128xbf16>,
    return
  }
  func.func @transform_0(%arg0: i32) -> (i32, i32) {
    %c0_i32 = arith.constant 0 : i32
    %c0_i32_0 = arith.constant 0 : i32
    return %arg0, %c0_i32 : i32, i32
  }
  func.func @transform_1(%arg0: i32) -> (i32, i32) {
    %c0_i32 = arith.constant 0 : i32
    %c0_i32_0 = arith.constant 0 : i32
    return %arg0, %c0_i32 : i32, i32
  }
  func.func @transform_2(%arg0: i32) -> (i32, i32) {
    %c0_i32 = arith.constant 0 : i32
    %c0_i32_0 = arith.constant 0 : i32
    %c0_i32_1 = arith.constant 0 : i32
    return %c0_i32, %c0_i32_0 : i32, i32
  }
  func.func @transform_3(%arg0: i32) -> (i32, i32) {
    %c0_i32 = arith.constant 0 : i32
    %c0_i32_0 = arith.constant 0 : i32
    %c0_i32_1 = arith.constant 0 : i32
    return %c0_i32, %c0_i32_0 : i32, i32
  }
  func.func @transform_4(%arg0: i32) -> (i32, i32) {
    %c0_i32 = arith.constant 0 : i32
    %c0_i32_0 = arith.constant 0 : i32
    %c0_i32_1 = arith.constant 0 : i32
    return %c0_i32, %c0_i32_0 : i32, i32
  }
  func.func @transform_5(%arg0: i32) -> (i32, i32) {
    %c0_i32 = arith.constant 0 : i32
    %c0_i32_0 = arith.constant 0 : i32
    %c0_i32_1 = arith.constant 0 : i32
    return %c0_i32, %c0_i32_0 : i32, i32
  }
  func.func @transform_6(%arg0: i32) -> (i32, i32) {
    %c0_i32 = arith.constant 0 : i32
    %c0_i32_0 = arith.constant 0 : i32
    return %arg0, %c0_i32 : i32, i32
  }
}

</mosaic_0001>

<bundles_post_ra>
// kernel: tpu_custom_call.1
= control target key start
LH: loop header
LB: loop body
LE: loop exit
PB: predicated region body
PF: predicated region fallthrough
CT: control target
= control target key end

     0   :  { %vm135_vm0 = vcmask 130048   ;;  %vm37_vm1 = vcmask 195584   ;;  %s497_s0 = inlined_call_operand.vmem [shape: f32[32,16], index: 0, kind: input, shape index: {}]   ;;  %s498_s1 = inlined_call_operand.vmem [shape: f32[32,24], index: 1, kind: input, shape index: {}]   ;;  %s499_s2 = inlined_call_operand.vmem [shape: f32[16,128], index: 2, kind: input, shape index: {}]   ;;  %s500_s3 = inlined_call_operand.vmem [shape: f32[1,128], index: 3, kind: input, shape index: {}]   ;;  %s501_s4 = inlined_call_operand.vmem [shape: f32[24,128], index: 4, kind: input, shape index: {}]   ;;  %s502_s5 = inlined_call_operand.vmem [shape: f32[1,128], index: 5, kind: input, shape index: {}]   ;;  %s503_s6 = inlined_call_operand.hbm [shape: bf16[32,128], index: 6, kind: output, shape index: {}]  }
   0x1   :  { %v34_v0 = vld [vmem:[%s501_s4] sm:$0xff]  ;;  %v35_v1 = vld [vmem:[%s501_s4 + $0x8] sm:$0xff]  ;;  %v36_v7 = vld [vmem:[%s501_s4 + $0x10] sm:$0xff] }
   0x2   :  { %v28_v2 = vld [vmem:[%s499_s2] sm:$0xff]  ;;  %v355_v3 = vpack.c.bf16 %v35_v1, %v34_v0  ;;  %v29_v4 = vld [vmem:[%s499_s2 + $0x8] sm:$0xff] }
   0x3   :  { %v24_v5 = vld [vmem:[%s497_s0] sm:$0xff]  ;;  %v359_v6 = vpack.c.bf16 %v29_v4, %v28_v2 }
   0x4   :  { %349 = vmatprep.mubr.msk.f32.mxu0 %vm135_vm0, %v24_v5  ;;  %v30_v8 = vld [vmem:[%s498_s1] sm:$0xff]  ;;  %356 = vmatprep.subr.bf16.mxu1 %v355_v3 }
   0x5   :  { %339 = vmatprep.mubr.msk.f32.mxu1 %vm37_vm1, %v30_v8  ;;  %358 = vmatpush3.bf16.msra.mxu1 %v355_v3 }
   0x6   :  { %360 = vmatprep.subr.bf16.mxu0 %v359_v6 }
   0x7   :  { %11 = vsyncpa [#allocation3], 0  ;;  %362 = vmatpush3.bf16.msra.mxu0 %v359_v6  ;;  %337 = vmatprep.subr.mxu1 %v36_v7  ;;  %v25_v9 = vld [vmem:[%s497_s0 + $0x8] sm:$0xff]  ;;  %v26_v11 = vld [vmem:[%s497_s0 + $0x10] sm:$0xff] }
   0x8   :  { %v31_v10 = vld [vmem:[%s498_s1 + $0x8] sm:$0xff]  ;;  %v32_v12 = vld [vmem:[%s498_s1 + $0x10] sm:$0xff]  ;;  %v27_v13 = vld [vmem:[%s497_s0 + $0x18] sm:$0xff] }
   0x9   :  { %338 = vmatpush3.msra.mxu1 %v36_v7  ;;  %v33_v14 = vld [vmem:[%s498_s1 + $0x18] sm:$0xff]  ;;  %v299_v17 = vld [vmem:[%s500_s3] ss:$0 sm:$0xff]  ;;  %s394_s1 = smov [#allocation2]  }
   0xa   :  { %350 = vmatmul.mubr.msk.f32.vlgmr.msra.gmra.mrb[0].mxu0 %vm135_vm0, %v25_v9  ;;  %340 = vmatmul.mubr.msk.f32.vlgmr.msra.gmra.mrb[0].mxu1 %vm37_vm1, %v31_v10  ;;  %v300_v21 = vld [vmem:[%s502_s5] ss:$0 sm:$0xff]  ;;  %s280_s3 = sshll.u32 %s394_s1, 4  ;;  %s281_s3 = int_to_ptr.vmem [resolvable:$true] %s280_s3 }
   0xb   :  { %352 = vmatprep.mubr.msk.f32.mxu0 %vm135_vm0, %v26_v11  ;;  %342 = vmatprep.mubr.msk.f32.mxu1 %vm37_vm1, %v32_v12  ;;  %s370_s5 = scalar_lea.vmem %s281_s3, 256  ;;  %p375_p1 = scmp.lt.s32.totalorder %s281_s3, %s281_s3 }
   0xc   :  { %p371_p0 = scmp.ne.s32.totalorder %s281_s3, %s370_s5  ;;  %p376_p2 = scmp.lt.s32.totalorder %s370_s5, %s370_s5 }
   0xe   :  { %353 = vmatmul.mubr.msk.f32.gmra.mrb[2].mxu0 %vm135_vm0, %v27_v13  ;;  %343 = vmatmul.mubr.msk.f32.gmra.mrb[2].mxu1 %vm37_vm1, %v33_v14  ;;  %p377_p3 = por %p376_p2, %p375_p1 }
  0x10   :  { %p378_p4 = pnand %p377_p3, %p371_p0 }
  0xdd   :  { %v351_v15 = vpop.f32.mrb[0].mxu0  ;;  %v341_v16 = vpop.f32.mrb[0].mxu1 }
  0xde   :  { %v214_v18 = vpop.f32.mrb[1].mxu0  ;;  %v220_v19 = vadd.f32 %v351_v15, %v341_v16  ;;  %v116_v20 = vpop.f32.mrb[1].mxu1 }
  0xdf   :  { %v215_v22 = vadd.f32 %v214_v18, %v116_v20 }
  0xe0   :  { %v241_v23 = vadd.f32 %v299_v17, %v220_v19 }
  0xe1   :  { %v354_v24 = vpop.f32.mrb[2].mxu0  ;;  %v240_v25 = vadd.f32 %v299_v17, %v215_v22  ;;  %v344_v26 = vpop.f32.mrb[2].mxu1 }
  0xe2   :  { %v224_v27 = vpop.f32.mrb[3].mxu0  ;;  %v252_v28 = vadd.f32 %v300_v21, %v241_v23  ;;  %v230_v29 = vadd.f32 %v354_v24, %v344_v26  ;;  %v126_v30 = vpop.f32.mrb[3].mxu1 }
  0xe3   :  { %v251_v31 = vadd.f32 %v300_v21, %v240_v25  ;;  %v225_v32 = vadd.f32 %v224_v27, %v126_v30 }
  0xe4   :  { %v243_v33 = vadd.f32 %v299_v17, %v230_v29 }
  0xe5   :  { %v312_v34 = vpack.c.bf16 %v252_v28, %v251_v31  ;;  %v242_v35 = vadd.f32 %v299_v17, %v225_v32 }
  0xe6   :  { %v254_v36 = vadd.f32 %v300_v21, %v243_v33 }
  0xe7   :  { %313 = vst [vmem:[#allocation2] sm:$0xff] %v312_v34   ;;  %v253_v37 = vadd.f32 %v300_v21, %v242_v35 }
  0xe9   :  { %v317_v38 = vpack.c.bf16 %v254_v36, %v253_v37 }
  0xeb   :  { %319 = vst [vmem:[#allocation2 + $0x8] sm:$0xff] %v317_v38  }
  0xec   :  { %381 = shalt.err (!%p378_p4)
}
  0xed   :  { %s382_s26 = scalar_lea.hbm %s503_s6, 256 }
  0xee   :  { %p383_p5 = scmp.ne.s32.totalorder %s503_s6, %s382_s26  ;;  %p386_p6 = scmp.lt.u32.totalorder %s382_s26, %s503_s6 }
  0xf0   :  { %p388_p7 = pnand %p386_p6, %p383_p5 }
  0xf2   :  { %391 = shalt.err (!%p388_p7)
}
  0xf3   :  { %s395_s7 = smov 64   ;;  %s396_s8 = smov 4  }
  0xf4   :  { %286 = dma.vmem_to_hbm [thread:$0]  %s281_s3, 256, %s503_s6, [#allocation3], %s395_s7, %s395_s7, %s396_s8  }
  0xf5   :  { %392 = dma.done.wait [#allocation3], 256  }
  0xf6   :  { %393 = vsyncadd [#allocation3], 4294967040 }
  0xf7   :  { %290 = vsyncpa [#allocation3], 1 }

</bundles_post_ra>
